<compile_context>
chip_gen: v6e
topology: v6e:2x2x1
jax: 0.10.0
libtpu: 0.0.40
codegen_flags: <defaults>
</compile_context>

<pallas_src>
import functools

import jax
import jax.numpy as jnp
from jax import lax
from jax.experimental import pallas as pl
from jax.experimental.pallas import tpu as pltpu


def _round_up(n, m):
    return ((n + m - 1) // m) * m


def _hidden_dtype_for_backend():
    """bf16 epilogues on bf16-native VPUs (v6e/v7x); f32 elsewhere (v5e, interpret)."""
    try:
        kind = jax.devices()[0].device_kind.lower()
    except Exception:
        return jnp.float32
    return jnp.bfloat16 if ("v6" in kind or "v7" in kind) else jnp.float32


def _mlp_kernel(x_ref, w1_ref, b1_ref, w2_ref, b2_ref, w3_ref, b3_ref,
                w4t_ref, b4_ref, o_ref):
    """One batch tile: x (TB, D) -> o (1, TB) (lane-dense, transposed)."""
    # Hidden-layer dtype is carried by the bias dtype chosen in the wrapper:
    # bf16 on v6e/v7x (bf16 VPU/EUP), f32 on v5e (f32-only VPU).
    hdt = b1_ref.dtype
    x = x_ref[...].astype(jnp.bfloat16)

    # Layer 1: Linear(input_dim, 128) + ReLU  (MXU, f32 accumulate, hdt output)
    h = jnp.dot(x, w1_ref[...], preferred_element_type=hdt)
    h = jnp.maximum(h + b1_ref[...], 0.0)

    # Dropout(0.2): identity in eval/inference mode.
    # TODO(synk): training-mode dropout (mask + 1/(1-p) scaling) not implemented.

    # Layer 2: Linear(128, 128) + ReLU
    h = jnp.dot(h.astype(jnp.bfloat16), w2_ref[...], preferred_element_type=hdt)
    h = jnp.maximum(h + b2_ref[...], 0.0)

    # Layer 3: Linear(128, 64) + ReLU
    h = jnp.dot(h.astype(jnp.bfloat16), w3_ref[...], preferred_element_type=hdt)
    h = jnp.maximum(h + b3_ref[...], 0.0)

    # Layer 4: Linear(64, 1) + Sigmoid, produced lane-dense as (1, TB).
    # w4t (1, 64) and h (TB, 64) are contracted over their LAST dims (a @ b.T
    # form, like attention scores), so the (TB, 64) operand needs no transpose.
    z = lax.dot_general(w4t_ref[...], h.astype(jnp.bfloat16),
                        dimension_numbers=(((1,), (1,)), ((), ())),
                        preferred_element_type=jnp.float32)
    o_ref[...] = jax.nn.sigmoid(z + b4_ref[...])  # b4 is (1, 1) f32, broadcasts


@functools.partial(jax.jit, static_argnames=("tile_b", "hidden_dtype"))
def simple_nn_forward(x, params, tile_b=2048, hidden_dtype=None):
    """x: (B, input_dim) f32 (callers with large input_dim may pass bf16 to halve the
    dominant HBM stream); params: (w1,b1,w2,b2,w3,b3,w4,b4), w_i (in,out), b_i (1,out)."""
    if hidden_dtype is None:
        hidden_dtype = _hidden_dtype_for_backend()   # resolved at trace time (static)
    B, D = x.shape
    w1, b1, w2, b2, w3, b3, w4, b4 = params

    # Weights in bf16 for the MXU (tiny, ~58 KiB total, resident in VMEM).
    w1, w2, w3 = (w.astype(jnp.bfloat16) for w in (w1, w2, w3))
    w4t = w4.T.astype(jnp.bfloat16)                  # (1, 64) for the a@b.T layer-4 form
    # Layer-1..3 biases carry the hidden dtype (drives the in-kernel epilogue dtype).
    b1, b2, b3 = (b.astype(hidden_dtype) for b in (b1, b2, b3))
    b4 = b4.astype(jnp.float32)

    # Batch tile: multiple of 128 so the (1, tb) output tile stays lane-dense
    # (unmasked vst) and the (tb, D) input block satisfies the (8,128) rule.
    tb = max(128, (int(tile_b) // 128) * 128)
    b128 = _round_up(B, 128)
    tb = min(tb, b128)
    # v7x megacore: keep the grid at >= 2 steps whenever the batch allows it.
    if b128 // tb < 2 and b128 >= 256:
        tb = max(128, (b128 // 2 // 128) * 128)
    bp = _round_up(B, tb)
    if bp != B:
        x = jnp.pad(x, ((0, bp - B), (0, 0)))        # padded rows are sliced off below
    grid = (bp // tb,)

    const2d = lambda i: (0, 0)  # weights/biases: same block every step -> VMEM resident
    in_specs = [
        pl.BlockSpec((tb, D), lambda i: (i, 0)),     # x streamed per batch tile
        pl.BlockSpec(w1.shape, const2d), pl.BlockSpec(b1.shape, const2d),
        pl.BlockSpec(w2.shape, const2d), pl.BlockSpec(b2.shape, const2d),
        pl.BlockSpec(w3.shape, const2d), pl.BlockSpec(b3.shape, const2d),
        pl.BlockSpec(w4t.shape, const2d), pl.BlockSpec(b4.shape, const2d),
    ]
    out = pl.pallas_call(
        _mlp_kernel,
        grid=grid,
        in_specs=in_specs,
        out_specs=pl.BlockSpec((1, tb), lambda i: (0, i)),   # lane-dense output tile
        out_shape=jax.ShapeDtypeStruct((1, bp), jnp.float32),
        compiler_params=pltpu.CompilerParams(
            dimension_semantics=("parallel",),               # megacore split on v7x
            # v5e's scoped-VMEM default is 16 MiB; 32 MiB gives headroom for
            # tile_b up to ~4096 and is safe on all generations (v7x phys = 64 MiB).
            vmem_limit_bytes=32 * 1024 * 1024),
    )(x, w1, b1, w2, b2, w3, b3, w4t, b4)
    # (1, Bp) lane-dense -> (B, 1) to match the PyTorch module's output shape.
    return out[0, :B].reshape(B, 1)


def init_params(key, input_dim):
    """Deterministic init mimicking PyTorch nn.Linear defaults (U(-1/sqrt(fan_in), ...))."""
    dims = [(input_dim, 128), (128, 128), (128, 64), (64, 1)]
    params = []
    for (fan_in, fan_out) in dims:
        key, kw, kb = jax.random.split(key, 3)
        bound = 1.0 / jnp.sqrt(fan_in)
        w = jax.random.uniform(kw, (fan_in, fan_out), jnp.float32, -bound, bound)
        b = jax.random.uniform(kb, (1, fan_out), jnp.float32, -bound, bound)
        params += [w, b]
    return tuple(params)


def _ref_forward(x, params, hidden_dtype):
    """Pure-JAX reference using the exact same bf16-at-the-dot / hidden-dtype recipe."""
    w1, b1, w2, b2, w3, b3, w4, b4 = params
    bf = jnp.bfloat16

    def layer(h, w, b):
        z = jnp.dot(h.astype(bf), w.astype(bf), preferred_element_type=hidden_dtype)
        return jnp.maximum(z + b.astype(hidden_dtype), 0.0)

    h = layer(x, w1, b1)
    h = layer(h, w2, b2)
    h = layer(h, w3, b3)
    z = jnp.dot(h.astype(bf), w4.astype(bf), preferred_element_type=jnp.float32) + b4
    return jax.nn.sigmoid(z)


if __name__ == "__main__":
    key = jax.random.PRNGKey(0)
    key, kx = jax.random.split(key)

    # Small shapes; batch chosen so the grid has 2 steps and exercises padding
    # (B=200 -> padded to 256, two 128-row tiles -> both v7x TCs get a tile).
    batch, input_dim = 200, 32
    x = jax.random.normal(kx, (batch, input_dim), jnp.float32)
    params = init_params(key, input_dim)

    hidden_dtype = _hidden_dtype_for_backend()
    out = simple_nn_forward(x, params, hidden_dtype=hidden_dtype)
    out = jax.block_until_ready(out)

    ref = _ref_forward(x, params, hidden_dtype)
    assert out.shape == (batch, 1), out.shape
    max_err = float(jnp.max(jnp.abs(out - jnp.asarray(ref, jnp.float32))))
    assert max_err < 5e-3, max_err

    print("KERNEL_OK")
</pallas_src>

<mosaic_0001>
module attributes {stable_mosaic.version = 11 : i64} {
  func.func @_mlp_kernel(%arg0: i32, %arg1: memref<128x32xf32, #tpu.memory_space<vmem>>, %arg2: memref<32x128xbf16, #tpu.memory_space<vmem>>, %arg3: memref<1x128xf32, #tpu.memory_space<vmem>>, %arg4: memref<128x128xbf16, #tpu.memory_space<vmem>>, %arg5: memref<1x128xf32, #tpu.memory_space<vmem>>, %arg6: memref<128x64xbf16, #tpu.memory_space<vmem>>, %arg7: memref<1x64xf32, #tpu.memory_space<vmem>>, %arg8: memref<1x64xbf16, #tpu.memory_space<vmem>>, %arg9: memref<1x1xf32, #tpu.memory_space<vmem>>, %arg10: memref<1x128xf32, #tpu.memory_space<vmem>>) attributes {dimension_semantics = [#tpu.dimension_semantics<parallel>], iteration_bounds = array<i64: 2>, scalar_prefetch = 0 : i64, scratch_operands = 0 : i64, tpu.core_type = #tpu.core_type<tc>, window_params = [{transform_indices = @transform_0, window_bounds = array<i64: 128, 32>}, {pipeline_mode = #tpu.pipeline_mode<synchronous>, transform_indices = @transform_1, window_bounds = array<i64: 32, 128>}, {pipeline_mode = #tpu.pipeline_mode<synchronous>, transform_indices = @transform_2, window_bounds = array<i64: 1, 128>}, {pipeline_mode = #tpu.pipeline_mode<synchronous>, transform_indices = @transform_3, window_bounds = array<i64: 128, 128>}, {pipeline_mode = #tpu.pipeline_mode<synchronous>, transform_indices = @transform_4, window_bounds = array<i64: 1, 128>}, {pipeline_mode = #tpu.pipeline_mode<synchronous>, transform_indices = @transform_5, window_bounds = array<i64: 128, 64>}, {pipeline_mode = #tpu.pipeline_mode<synchronous>, transform_indices = @transform_6, window_bounds = array<i64: 1, 64>}, {pipeline_mode = #tpu.pipeline_mode<synchronous>, transform_indices = @transform_7, window_bounds = array<i64: 1, 64>}, {pipeline_mode = #tpu.pipeline_mode<synchronous>, transform_indices = @transform_8, window_bounds = array<i64: 1, 1>}, {transform_indices = @transform_9, window_bounds = array<i64: 1, 128>}]} {
    %c0 = arith.constant 0 : index
    %c0_0 = arith.constant 0 : index
    %0 = vector.load %arg1[%c0, %c0_0] : memref<128x32xf32, #tpu.memory_space<vmem>>, vector<128x32xf32>
    %1 = arith.truncf %0 : vector<128x32xf32> to vector<128x32xbf16>
    %c0_1 = arith.constant 0 : index
    %c0_2 = arith.constant 0 : index
    %2 = vector.load %arg2[%c0_1, %c0_2] : memref<32x128xbf16, #tpu.memory_space<vmem>>, vector<32x128xbf16>
    %cst = arith.constant dense<0.000000e+00> : vector<128x128xf32>
    %3 = tpu.matmul %1, %2, %cst {dimension_numbers = #tpu.dot_dimension_numbers<[1], [0], [0], [1], [0, 0, 1, 1], [], []>} : vector<128x32xbf16>, vector<32x128xbf16>, vector<128x128xf32> -> vector<128x128xf32>
    %c0_3 = arith.constant 0 : index
    %c0_4 = arith.constant 0 : index
    %4 = vector.load %arg3[%c0_3, %c0_4] : memref<1x128xf32, #tpu.memory_space<vmem>>, vector<1x128xf32>
    %5 = vector.broadcast %4 : vector<1x128xf32> to vector<128x128xf32>
    %6 = arith.addf %3, %5 : vector<128x128xf32>
    %cst_5 = arith.constant 0.000000e+00 : f32
    %7 = vector.broadcast %cst_5 : f32 to vector<128x128xf32>
    %8 = arith.maximumf %6, %7 : vector<128x128xf32>
    %9 = arith.truncf %8 : vector<128x128xf32> to vector<128x128xbf16>
    %c0_6 = arith.constant 0 : index
    %c0_7 = arith.constant 0 : index
    %10 = vector.load %arg4[%c0_6, %c0_7] : memref<128x128xbf16, #tpu.memory_space<vmem>>, vector<128x128xbf16>
    %cst_8 = arith.constant dense<0.000000e+00> : vector<128x128xf32>
    %11 = tpu.matmul %9, %10, %cst_8 {dimension_numbers = #tpu.dot_dimension_numbers<[1], [0], [0], [1], [0, 0, 1, 1], [], []>} : vector<128x128xbf16>, vector<128x128xbf16>, vector<128x128xf32> -> vector<128x128xf32>
    %c0_9 = arith.constant 0 : index
    %c0_10 = arith.constant 0 : index
    %12 = vector.load %arg5[%c0_9, %c0_10] : memref<1x128xf32, #tpu.memory_space<vmem>>, vector<1x128xf32>
    %13 = vector.broadcast %12 : vector<1x128xf32> to vector<128x128xf32>
    %14 = arith.addf %11, %13 : vector<128x128xf32>
    %cst_11 = arith.constant 0.000000e+00 : f32
    %15 = vector.broadcast %cst_11 : f32 to vector<128x128xf32>
    %16 = arith.maximumf %14, %15 : vector<128x128xf32>
    %17 = arith.truncf %16 : vector<128x128xf32> to vector<128x128xbf16>
    %c0_12 = arith.constant 0 : index
    %c0_13 = arith.constant 0 : index
    %18 = vector.load %arg6[%c0_12, %c0_13] : memref<128x64xbf16, #tpu.memory_space<vmem>>, vector<128x64xbf16>
    %cst_14 = arith.constant dense<0.000000e+00> : vector<128x64xf32>
    %19 = tpu.matmul %17, %18, %cst_14 {dimension_numbers = #tpu.dot_dimension_numbers<[1], [0], [0], [1], [0, 0, 1, 1], [], []>} : vector<128x128xbf16>, vector<128x64xbf16>, vector<128x64xf32> -> vector<128x64xf32>
    %c0_15 = arith.constant 0 : index
    %c0_16 = arith.constant 0 : index
    %20 = vector.load %arg7[%c0_15, %c0_16] : memref<1x64xf32, #tpu.memory_space<vmem>>, vector<1x64xf32>
    %21 = vector.broadcast %20 : vector<1x64xf32> to vector<128x64xf32>
    %22 = arith.addf %19, %21 : vector<128x64xf32>
    %cst_17 = arith.constant 0.000000e+00 : f32
    %23 = vector.broadcast %cst_17 : f32 to vector<128x64xf32>
    %24 = arith.maximumf %22, %23 : vector<128x64xf32>
    %c0_18 = arith.constant 0 : index
    %c0_19 = arith.constant 0 : index
    %25 = vector.load %arg8[%c0_18, %c0_19] : memref<1x64xbf16, #tpu.memory_space<vmem>>, vector<1x64xbf16>
    %26 = arith.truncf %24 : vector<128x64xf32> to vector<128x64xbf16>
    %cst_20 = arith.constant dense<0.000000e+00> : vector<1x128xf32>
    %27 = tpu.matmul %25, %26, %cst_20 {dimension_numbers = #tpu.dot_dimension_numbers<[1], [1], [0], [0], [0, 0, 1, 0], [], []>} : vector<1x64xbf16>, vector<128x64xbf16>, vector<1x128xf32> -> vector<1x128xf32>
    %c0_21 = arith.constant 0 : index
    %c0_22 = arith.constant 0 : index
    %28 = vector.load %arg9[%c0_21, %c0_22] : memref<1x1xf32, #tpu.memory_space<vmem>>, vector<1x1xf32>
    %29 = vector.broadcast %28 : vector<1x1xf32> to vector<1x128xf32>
    %30 = arith.addf %27, %29 : vector<1x128xf32>
    %31 = arith.negf %30 : vector<1x128xf32>
    %32 = math.exp %31 : vector<1x128xf32>
    %cst_23 = arith.constant 1.000000e+00 : f32
    %33 = vector.broadcast %cst_23 : f32 to vector<1x128xf32>
    %34 = arith.addf %33, %32 : vector<1x128xf32>
    %35 = arith.divf %33, %34 : vector<1x128xf32>
    %c0_24 = arith.constant 0 : index
    %c0_25 = arith.constant 0 : index
    %36 = vector.load %arg10[%c0_24, %c0_25] : memref<1x128xf32, #tpu.memory_space<vmem>>, vector<1x128xf32>
    tpu.vector_store %arg10[%c0_24, %c0_25], %35 {strides = array<i32>} : memref<1x128xf32, #tpu.memory_space<vmem>>, vector<1x128xf32>,
    return
  }
  func.func @transform_0(%arg0: i32) -> (i32, i32) {
    %c0_i32 = arith.constant 0 : i32
    %c0_i32_0 = arith.constant 0 : i32
    return %arg0, %c0_i32 : i32, i32
  }
  func.func @transform_1(%arg0: i32) -> (i32, i32) {
    %c0_i32 = arith.constant 0 : i32
    %c0_i32_0 = arith.constant 0 : i32
    %c0_i32_1 = arith.constant 0 : i32
    return %c0_i32, %c0_i32_0 : i32, i32
  }
  func.func @transform_2(%arg0: i32) -> (i32, i32) {
    %c0_i32 = arith.constant 0 : i32
    %c0_i32_0 = arith.constant 0 : i32
    %c0_i32_1 = arith.constant 0 : i32
    return %c0_i32, %c0_i32_0 : i32, i32
  }
  func.func @transform_3(%arg0: i32) -> (i32, i32) {
    %c0_i32 = arith.constant 0 : i32
    %c0_i32_0 = arith.constant 0 : i32
    %c0_i32_1 = arith.constant 0 : i32
    return %c0_i32, %c0_i32_0 : i32, i32
  }
  func.func @transform_4(%arg0: i32) -> (i32, i32) {
    %c0_i32 = arith.constant 0 : i32
    %c0_i32_0 = arith.constant 0 : i32
    %c0_i32_1 = arith.constant 0 : i32
    return %c0_i32, %c0_i32_0 : i32, i32
  }
  func.func @transform_5(%arg0: i32) -> (i32, i32) {
    %c0_i32 = arith.constant 0 : i32
    %c0_i32_0 = arith.constant 0 : i32
    %c0_i32_1 = arith.constant 0 : i32
    return %c0_i32, %c0_i32_0 : i32, i32
  }
  func.func @transform_6(%arg0: i32) -> (i32, i32) {
    %c0_i32 = arith.constant 0 : i32
    %c0_i32_0 = arith.constant 0 : i32
    %c0_i32_1 = arith.constant 0 : i32
    return %c0_i32, %c0_i32_0 : i32, i32
  }
  func.func @transform_7(%arg0: i32) -> (i32, i32) {
    %c0_i32 = arith.constant 0 : i32
    %c0_i32_0 = arith.constant 0 : i32
    %c0_i32_1 = arith.constant 0 : i32
    return %c0_i32, %c0_i32_0 : i32, i32
  }
  func.func @transform_8(%arg0: i32) -> (i32, i32) {
    %c0_i32 = arith.constant 0 : i32
    %c0_i32_0 = arith.constant 0 : i32
    %c0_i32_1 = arith.constant 0 : i32
    return %c0_i32, %c0_i32_0 : i32, i32
  }
  func.func @transform_9(%arg0: i32) -> (i32, i32) {
    %c0_i32 = arith.constant 0 : i32
    %c0_i32_0 = arith.constant 0 : i32
    return %c0_i32, %arg0 : i32, i32
  }
}

</mosaic_0001>

<bundles_post_ra>
// kernel: simple_nn_forward.1
= control target key start
LH: loop header
LB: loop body
LE: loop exit
PB: predicated region body
PF: predicated region fallthrough
CT: control target
= control target key end

     0   :  { %s1337_s11 = smov 0   ;;  %s1493_s0 = inlined_call_operand.vmem [shape: f32[256,32], index: 0, kind: input, shape index: {}]   ;;  %s1494_s1 = inlined_call_operand.vmem [shape: bf16[32,128], index: 1, kind: input, shape index: {}]   ;;  %s1495_s2 = inlined_call_operand.vmem [shape: f32[1,128], index: 2, kind: input, shape index: {}]   ;;  %s1496_s3 = inlined_call_operand.vmem [shape: bf16[128,128], index: 3, kind: input, shape index: {}]   ;;  %s1497_s4 = inlined_call_operand.vmem [shape: f32[1,128], index: 4, kind: input, shape index: {}]   ;;  %s1498_s5 = inlined_call_operand.vmem [shape: bf16[128,64], index: 5, kind: input, shape index: {}]   ;;  %s1499_s6 = inlined_call_operand.vmem [shape: f32[1,64], index: 6, kind: input, shape index: {}]   ;;  %s1500_s7 = inlined_call_operand.vmem [shape: bf16[1,64], index: 7, kind: input, shape index: {}]   ;;  %s1501_s8 = inlined_call_operand.<no memory space> [shape: f32[1,1], index: 8, kind: input, shape index: {}]   ;;  %s1502_s9 = inlined_call_operand.vmem [shape: f32[1,256], index: 9, kind: output, shape index: {}]  }
   0x1   :  { %v14_v0 = vstv %s1501_s8 }
   0x2   :  { %15 = vst [vmem:[#allocation2] sm:$0x1] %v14_v0 }
   0x3 LB: > { %s1343_s12 = sadd.s32 4294967295, %s1279_s11   ;;  %p1048_p0 = scmp.ge.s32.totalorder %s1279_s11, 1  ;;  %s1279_s11 = sphi %s1337_s11, %s21_s11  }
   0x4   : > { %p290_p1 = scmp.lt.s32.totalorder %s1279_s11, 3 }
   0x6   : > { %p291_p2 = pnand %p1048_p0, %p290_p1 }
   0x7   : > { %s1049_s8 = sshll.u32 (!%p291_p2), %s1343_s12, 4  ;;  %p330_p4 = scmp.lt.s32.totalorder (!%p291_p2), %s1343_s12, 1 }
   0x8   : > { %294 = sbr.rel (%p291_p2) target bundleno = 953 (0x3b9), region = 56  ;;  %p325_p3 = scmp.lt.s32.totalorder (!%p291_p2), %s1049_s8, 31 }
   0xd   : > { %v1251_v1 = vld [vmem:[%s1494_s1 + $0x8] sm:$0xff]   ;;  %v1252_v2 = vld [vmem:[%s1494_s1] sm:$0xff]   ;;  %v1253_v3 = vld [vmem:[%s1496_s3 + $0x38] sm:$0xff]   ;;  %s1504_s8 = smov (!%p325_p3, %s1049_s8), 31  ;;  %vm381_vm0 = vcmask 261120   ;;  %vm1282_vm1 = vmmov 0  }
   0xe   : > { %1135 = vmatprep.subr.bf16.mxu0 %v1251_v1  ;;  %v1254_v4 = vld [vmem:[%s1496_s3 + $0x30] sm:$0xff]   ;;  %1155 = vmatprep.subr.bf16.mxu1 %v1253_v3  ;;  %s1050_s21 = sshll.u32 %s1504_s8, 3  ;;  %v1255_v5 = vld [vmem:[%s1496_s3 + $0x28] sm:$0xff]   ;;  %v1256_v15 = vld [vmem:[%s1496_s3 + $0x20] sm:$0xff]   ;;  %vm922_vm2 = vcmask 523264   ;;  %s1506_s12 = smov (!%p330_p4, %s1343_s12), 1 }
   0xf   : > { %1136 = vmatpush3.bf16.msra.mxu0 %v1251_v1  ;;  %1156 = vmatpush3.bf16.msra.mxu1 %v1253_v3  ;;  %s1363_s24 = scalar_lea.vmem %s1493_s0, %s1050_s21  ;;  %v1257_v20 = vld [vmem:[%s1496_s3 + $0x18] sm:$0xff]   ;;  %v1258_v32 = vld [vmem:[%s1496_s3 + $0x10] sm:$0xff]   ;;  %v1259_v33 = vld [vmem:[%s1496_s3 + $0x8] sm:$0xff]   ;;  %s332_s23 = scalar_lea.vmem %s1502_s9, %s1506_s12 }
  0x10   : > { %1137 = vmatprep.subr.bf16.mxu0 %v1252_v2  ;;  %1157 = vmatprep.subr.bf16.mxu1 %v1254_v4  ;;  %v334_v6 = vld [vmem:[%s1363_s24] sm:$0xff]  ;;  %v335_v7 = vld [vmem:[%s1363_s24 + $0x8] sm:$0xff]  ;;  %v336_v8 = vld [vmem:[%s1363_s24 + $0x10] sm:$0xff] }
  0x11   : > { %v350_v9 = vpack.c.bf16 %v335_v7, %v334_v6  ;;  %v337_v10 = vld [vmem:[%s1363_s24 + $0x18] sm:$0xff]  ;;  %v338_v11 = vld [vmem:[%s1363_s24 + $0x20] sm:$0xff]  ;;  %v339_v12 = vld [vmem:[%s1363_s24 + $0x28] sm:$0xff] }
  0x12   : > { %v351_v13 = vpack.c.bf16 %v337_v10, %v336_v8  ;;  %v352_v14 = vpack.c.bf16 %v339_v12, %v338_v11  ;;  %v340_v16 = vld [vmem:[%s1363_s24 + $0x30] sm:$0xff]  ;;  %v341_v17 = vld [vmem:[%s1363_s24 + $0x38] sm:$0xff]  ;;  %v342_v18 = vld [vmem:[%s1363_s24 + $0x40] sm:$0xff] }
  0x13   : > { %1138 = vmatpush3.bf16.msra.mxu0 %v1252_v2  ;;  %1158 = vmatpush3.bf16.msra.mxu1 %v1254_v4  ;;  %v343_v19 = vld [vmem:[%s1363_s24 + $0x48] sm:$0xff]  ;;  %v353_v21 = vpack.c.bf16 %v341_v17, %v340_v16  ;;  %v344_v23 = vld [vmem:[%s1363_s24 + $0x50] sm:$0xff]  ;;  %v345_v24 = vld [vmem:[%s1363_s24 + $0x58] sm:$0xff] }
  0x14   : > { %1139 = vmatprep.mubr.msk.bf16.mxu0 %vm381_vm0, %v350_v9  ;;  %1159 = vmatprep.subr.bf16.mxu1 %v1255_v5  ;;  %v354_v22 = vpack.c.bf16 %v343_v19, %v342_v18  ;;  %v346_v25 = vld [vmem:[%s1363_s24 + $0x60] sm:$0xff]  ;;  %v347_v26 = vld [vmem:[%s1363_s24 + $0x68] sm:$0xff]  ;;  %v355_v27 = vpack.c.bf16 %v345_v24, %v344_v23  ;;  %v348_v29 = vld [vmem:[%s1363_s24 + $0x70] sm:$0xff] }
  0x15   : > { %v356_v28 = vpack.c.bf16 %v347_v26, %v346_v25  ;;  %v349_v30 = vld [vmem:[%s1363_s24 + $0x78] sm:$0xff]  ;;  %v1260_v34 = vld [vmem:[%s1496_s3] sm:$0xff]   ;;  %v1262_v36 = vld [vmem:[%s1498_s5 + $0x30] sm:$0xff]  }
  0x16   : > { %1140 = vmatmul.mubr.msk.bf16.vlgmr.msra.gmra.mxu0 %vm381_vm0, %v351_v13  ;;  %v357_v31 = vpack.c.bf16 %v349_v30, %v348_v29  ;;  %v1261_v35 = vld [vmem:[%s1498_s5 + $0x38] sm:$0xff]   ;;  %v1263_v37 = vld [vmem:[%s1498_s5 + $0x28] sm:$0xff]   ;;  %v1264_v38 = vld [vmem:[%s1498_s5 + $0x20] sm:$0xff]  }
  0x17   : > { %1143 = vmatprep.mubr.msk.bf16.mxu0 %vm381_vm0, %v352_v14  ;;  %1160 = vmatpush3.bf16.msra.mxu1 %v1255_v5  ;;  %v1265_v39 = vld [vmem:[%s1498_s5 + $0x18] sm:$0xff]   ;;  %v1051_v42 = vld [vmem:[%s1495_s2] ss:$0 sm:$0xff] }
  0x18   : > { %1161 = vmatprep.subr.bf16.mxu1 %v1256_v15  ;;  %1187 = vmatprep.subr.bf16.mxu0 %v1261_v35 }
  0x19   : > { %1188 = vmatpush3.bf16.msra.mxu0 %v1261_v35  ;;  %v1268_v35 = vld [vmem:[%s1498_s5] sm:$0xff]  }
  0x1a   : > { %1189 = vmatprep.subr.bf16.mxu0 %v1262_v36 }
  0x1b   : > { %1162 = vmatpush3.bf16.msra.mxu1 %v1256_v15 }
  0x1c   : > { %1163 = vmatprep.subr.bf16.mxu1 %v1257_v20 }
  0x1d   : > { %1190 = vmatpush3.bf16.msra.mxu0 %v1262_v36 }
  0x1e   : > { %1144 = vmatmul.mubr.msk.bf16.gmra.mxu0 %vm381_vm0, %v353_v21  ;;  %1191 = vmatprep.subr.bf16.mxu0 %v1263_v37 }
  0x1f   : > { %1147 = vmatprep.mubr.msk.bf16.mxu0 %vm381_vm0, %v354_v22  ;;  %1164 = vmatpush3.bf16.msra.mxu1 %v1257_v20 }
  0x20   : > { %1165 = vmatprep.subr.bf16.mxu1 %v1258_v32 }
  0x21   : > { %1192 = vmatpush3.bf16.msra.mxu0 %v1263_v37 }
  0x22   : > { %1193 = vmatprep.subr.bf16.mxu0 %v1264_v38 }
  0x23   : > { %1166 = vmatpush3.bf16.msra.mxu1 %v1258_v32 }
  0x24   : > { %1167 = vmatprep.subr.bf16.mxu1 %v1259_v33 }
  0x25   : > { %1194 = vmatpush3.bf16.msra.mxu0 %v1264_v38  ;;  %v1062_v38 = vld [vmem:[%s1497_s4] ss:$0 sm:$0xff] }
  0x26   : > { %1148 = vmatmul.mubr.msk.bf16.gmra.mxu0 %vm381_vm0, %v355_v27  ;;  %1195 = vmatprep.subr.bf16.mxu0 %v1265_v39 }
  0x27   : > { %1151 = vmatprep.mubr.msk.bf16.mxu0 %vm381_vm0, %v356_v28  ;;  %1168 = vmatpush3.bf16.msra.mxu1 %v1259_v33  ;;  %v1266_v33 = vld [vmem:[%s1498_s5 + $0x10] sm:$0xff]  }
  0x28   : > { %1169 = vmatprep.subr.bf16.mxu1 %v1260_v34 }
  0x29   : > { %1196 = vmatpush3.bf16.msra.mxu0 %v1265_v39 }
  0x2a   : > { %1197 = vmatprep.subr.bf16.mxu0 %v1266_v33 }
  0x2b   : > { %1170 = vmatpush3.bf16.msra.mxu1 %v1260_v34  ;;  %v1267_v34 = vld [vmem:[%s1498_s5 + $0x8] sm:$0xff]  }
  0x2d   : > { %1198 = vmatpush3.bf16.msra.mxu0 %v1266_v33  ;;  %v1442_v33 = vld [vmem:[%s1499_s6] ss:$0 sm:$0xff] }
  0x2e   : > { %1152 = vmatmul.mubr.msk.bf16.gmra.mxu0 %vm381_vm0, %v357_v31  ;;  %1199 = vmatprep.subr.bf16.mxu0 %v1267_v34 }
  0x31   : > { %1200 = vmatpush3.bf16.msra.mxu0 %v1267_v34 }
  0x32   : > { %1201 = vmatprep.subr.bf16.mxu0 %v1268_v35 }
  0x35   : > { %1202 = vmatpush3.bf16.msra.mxu0 %v1268_v35 }
  0xd6   : > { %v1141_v40 = vpop.f32.mrf.mxu0 }
  0xd7   : > { %v449_v46 = vadd.f32 %v1141_v40, %v1051_v42 }
  0xd8   : > { %v440_v41 = vpop.f32.mrf.mxu0 }
  0xd9   : > { %v441_v44 = vadd.f32 %v1051_v42, %v440_v41  ;;  %v505_v53 = vmax.f32 %v449_v46, 0.0 }
  0xda   : > { %v1142_v43 = vpop.f32.mrf.mxu0 }
  0xdb   : > { %v452_v45 = vadd.f32 %v1142_v43, %v1051_v42  ;;  %v503_v51 = vmax.f32 %v441_v44, 0.0 }
  0xdc   : > { %v443_v47 = vpop.f32.mrf.mxu0 }
  0xdd   : > { %v444_v48 = vadd.f32 %v1051_v42, %v443_v47  ;;  %v506_v49 = vmax.f32 %v452_v45, 0.0 }
  0xde   : > { %v1145_v50 = vpop.f32.mrf.mxu0 }
  0xdf   : > { %v504_v52 = vmax.f32 %v444_v48, 0.0  ;;  %v520_v56 = vpack.c.bf16 %v506_v49, %v505_v53  ;;  %v465_v60 = vadd.f32 %v1145_v50, %v1051_v42 }
  0xe0   : > { %v456_v54 = vpop.f32.mrf.mxu0 }
  0xe1   : > { %v519_v55 = vpack.c.bf16 %v504_v52, %v503_v51  ;;  %v457_v58 = vadd.f32 %v1051_v42, %v456_v54  ;;  %v509_v3 = vmax.f32 %v465_v60, 0.0 }
  0xe2   : > { %v1146_v57 = vpop.f32.mrf.mxu0 }
  0xe3   : > { %v468_v59 = vadd.f32 %v1146_v57, %v1051_v42  ;;  %1171 = vmatprep.mubr.bf16.mxu1 %v519_v55  ;;  %v507_v1 = vmax.f32 %v457_v58, 0.0 }
  0xe4   : > { %v459_v61 = vpop.f32.mrf.mxu0  ;;  %1172 = vmatmul.mubr.bf16.vlgmr.msra.gmra.mxu1 %v520_v56 }
  0xe5   : > { %v460_v62 = vadd.f32 %v1051_v42, %v459_v61  ;;  %v510_v63 = vmax.f32 %v468_v59, 0.0 }
  0xe6   : > { %v1149_v0 = vpop.f32.mrf.mxu0 }
  0xe7   : > { %v508_v2 = vmax.f32 %v460_v62, 0.0  ;;  %v522_v6 = vpack.c.bf16 %v510_v63, %v509_v3  ;;  %v481_v10 = vadd.f32 %v1149_v0, %v1051_v42 }
  0xe8   : > { %v472_v4 = vpop.f32.mrf.mxu0 }
  0xe9   : > { %v521_v5 = vpack.c.bf16 %v508_v2, %v507_v1  ;;  %v473_v8 = vadd.f32 %v1051_v42, %v472_v4  ;;  %v513_v17 = vmax.f32 %v481_v10, 0.0 }
  0xea   : > { %v1150_v7 = vpop.f32.mrf.mxu0 }
  0xeb   : > { %v484_v9 = vadd.f32 %v1150_v7, %v1051_v42  ;;  %1175 = vmatprep.mubr.bf16.mxu1 %v521_v5  ;;  %v511_v15 = vmax.f32 %v473_v8, 0.0 }
  0xec   : > { %v475_v11 = vpop.f32.mrf.mxu0  ;;  %1176 = vmatmul.mubr.bf16.gmra.mxu1 %v522_v6 }
  0xed   : > { %v476_v12 = vadd.f32 %v1051_v42, %v475_v11  ;;  %v514_v13 = vmax.f32 %v484_v9, 0.0 }
  0xee   : > { %v1153_v14 = vpop.f32.mrf.mxu0 }
  0xef   : > { %v512_v16 = vmax.f32 %v476_v12, 0.0  ;;  %v524_v20 = vpack.c.bf16 %v514_v13, %v513_v17  ;;  %v497_v24 = vadd.f32 %v1153_v14, %v1051_v42 }
  0xf0   : > { %v488_v18 = vpop.f32.mrf.mxu0 }
  0xf1   : > { %v523_v19 = vpack.c.bf16 %v512_v16, %v511_v15  ;;  %v489_v22 = vadd.f32 %v1051_v42, %v488_v18  ;;  %v517_v30 = vmax.f32 %v497_v24, 0.0 }
  0xf2   : > { %v1154_v21 = vpop.f32.mrf.mxu0 }
  0xf3   : > { %v500_v23 = vadd.f32 %v1154_v21, %v1051_v42  ;;  %1179 = vmatprep.mubr.bf16.mxu1 %v523_v19  ;;  %v515_v28 = vmax.f32 %v489_v22, 0.0 }
  0xf4   : > { %v491_v25 = vpop.f32.mrf.mxu0  ;;  %1180 = vmatmul.mubr.bf16.gmra.mxu1 %v524_v20 }
  0xf5   : > { %v492_v26 = vadd.f32 %v1051_v42, %v491_v25  ;;  %v518_v27 = vmax.f32 %v500_v23, 0.0 }
  0xf7   : > { %v516_v29 = vmax.f32 %v492_v26, 0.0  ;;  %v526_v32 = vpack.c.bf16 %v518_v27, %v517_v30  ;;  %v912_v30 = vld [vmem:[#allocation2] sm:$0x1] }
  0xf9   : > { %v525_v31 = vpack.c.bf16 %v516_v29, %v515_v28  ;;  %v1281_v29 = vmov 0.0  }
  0xfa   : > { %1219 = vmatprep.subr.bf16.mxu1 %v1281_v29 }
  0xfb   : > { %1183 = vmatprep.mubr.bf16.mxu1 %v525_v31  ;;  %v1283_v31 = vmov 0  }
  0xfc   : > { %1184 = vmatmul.mubr.bf16.gmra.mxu1 %v526_v32  ;;  %1250 = vset.pattern.permute.xlu0 %v1283_v31 }
  0xfd   : > { %1235 = vmatprep.mubr.msk.bf16.mxu1 %vm1282_vm1, %v1281_v29  ;;  %915 = vperm.xlu0 %1250, %v912_v30  }
 0x1a4   : > { %v1173_v36 = vpop.f32.mrf.mxu1 }
 0x1a5   : > { %v641_v42 = vadd.f32 %v1173_v36, %v1062_v38 }
 0x1a6   : > { %v632_v37 = vpop.f32.mrf.mxu1 }
 0x1a7   : > { %v633_v40 = vadd.f32 %v1062_v38, %v632_v37  ;;  %v697_v49 = vmax.f32 %v641_v42, 0.0 }
 0x1a8   : > { %v1174_v39 = vpop.f32.mrf.mxu1 }
 0x1a9   : > { %v644_v41 = vadd.f32 %v1174_v39, %v1062_v38  ;;  %v695_v47 = vmax.f32 %v633_v40, 0.0 }
 0x1aa   : > { %v635_v43 = vpop.f32.mrf.mxu1 }
 0x1ab   : > { %v636_v44 = vadd.f32 %v1062_v38, %v635_v43  ;;  %v698_v45 = vmax.f32 %v644_v41, 0.0 }
 0x1ac   : > { %v1177_v46 = vpop.f32.mrf.mxu1 }
 0x1ad   : > { %v696_v48 = vmax.f32 %v636_v44, 0.0  ;;  %v712_v52 = vpack.c.bf16 %v698_v45, %v697_v49  ;;  %v657_v56 = vadd.f32 %v1177_v46, %v1062_v38 }
 0x1ae   : > { %v648_v50 = vpop.f32.mrf.mxu1 }
 0x1af   : > { %v711_v51 = vpack.c.bf16 %v696_v48, %v695_v47  ;;  %v649_v54 = vadd.f32 %v1062_v38, %v648_v50  ;;  %v701_v63 = vmax.f32 %v657_v56, 0.0 }
 0x1b0   : > { %v1178_v53 = vpop.f32.mrf.mxu1 }
 0x1b1   : > { %v660_v55 = vadd.f32 %v1178_v53, %v1062_v38  ;;  %1203 = vmatprep.mubr.bf16.mxu0 %v711_v51  ;;  %v699_v61 = vmax.f32 %v649_v54, 0.0 }
 0x1b2   : > { %v651_v57 = vpop.f32.mrf.mxu1  ;;  %1204 = vmatmul.mubr.bf16.vlgmr.msra.gmra.mxu0 %v712_v52 }
 0x1b3   : > { %v652_v58 = vadd.f32 %v1062_v38, %v651_v57  ;;  %v702_v59 = vmax.f32 %v660_v55, 0.0 }
 0x1b4   : > { %v1181_v60 = vpop.f32.mrf.mxu1 }
 0x1b5   : > { %v700_v62 = vmax.f32 %v652_v58, 0.0  ;;  %v714_v2 = vpack.c.bf16 %v702_v59, %v701_v63  ;;  %v673_v6 = vadd.f32 %v1181_v60, %v1062_v38 }
 0x1b6   : > { %v664_v0 = vpop.f32.mrf.mxu1 }
 0x1b7   : > { %v713_v1 = vpack.c.bf16 %v700_v62, %v699_v61  ;;  %v665_v4 = vadd.f32 %v1062_v38, %v664_v0  ;;  %v705_v13 = vmax.f32 %v673_v6, 0.0 }
 0x1b8   : > { %v1182_v3 = vpop.f32.mrf.mxu1 }
 0x1b9   : > { %v676_v5 = vadd.f32 %v1182_v3, %v1062_v38  ;;  %1207 = vmatprep.mubr.bf16.mxu0 %v713_v1  ;;  %v703_v11 = vmax.f32 %v665_v4, 0.0 }
 0x1ba   : > { %v667_v7 = vpop.f32.mrf.mxu1  ;;  %1208 = vmatmul.mubr.bf16.gmra.mxu0 %v714_v2 }
 0x1bb   : > { %v668_v8 = vadd.f32 %v1062_v38, %v667_v7  ;;  %v706_v9 = vmax.f32 %v676_v5, 0.0 }
 0x1bc   : > { %v1185_v10 = vpop.f32.mrf.mxu1 }
 0x1bd   : > { %v704_v12 = vmax.f32 %v668_v8, 0.0  ;;  %v716_v16 = vpack.c.bf16 %v706_v9, %v705_v13  ;;  %v689_v20 = vadd.f32 %v1185_v10, %v1062_v38 }
 0x1be   : > { %v680_v14 = vpop.f32.mrf.mxu1 }
 0x1bf   : > { %v715_v15 = vpack.c.bf16 %v704_v12, %v703_v11  ;;  %v681_v18 = vadd.f32 %v1062_v38, %v680_v14  ;;  %v709_v26 = vmax.f32 %v689_v20, 0.0 }
 0x1c0   : > { %v1186_v17 = vpop.f32.mrf.mxu1 }
 0x1c1   : > { %v692_v19 = vadd.f32 %v1186_v17, %v1062_v38  ;;  %1211 = vmatprep.mubr.bf16.mxu0 %v715_v15  ;;  %v707_v24 = vmax.f32 %v681_v18, 0.0 }
 0x1c2   : > { %v683_v21 = vpop.f32.mrf.mxu1  ;;  %1212 = vmatmul.mubr.bf16.gmra.mxu0 %v716_v16 }
 0x1c3   : > { %v684_v22 = vadd.f32 %v1062_v38, %v683_v21  ;;  %v710_v23 = vmax.f32 %v692_v19, 0.0 }
 0x1c5   : > { %v708_v25 = vmax.f32 %v684_v22, 0.0  ;;  %v718_v28 = vpack.c.bf16 %v710_v23, %v709_v26 }
 0x1c7   : > { %v717_v27 = vpack.c.bf16 %v708_v25, %v707_v24 }
 0x1c9   : > { %1215 = vmatprep.mubr.bf16.mxu0 %v717_v27 }
 0x1ca   : > { %1216 = vmatmul.mubr.bf16.gmra.mxu0 %v718_v28 }
 0x272   : > { %v1205_v32 = vpop.f32.mrf.mxu0 }
 0x273   : > { %v833_v35 = vadd.f32 %v1205_v32, %v1442_v33 }
 0x274   : > { %v824_v34 = vpop.f32.mrf.mxu0 }
 0x275   : > { %v825_v37 = vadd.f32 %v1442_v33, %v824_v34  ;;  %v889_v40 = vmax.f32 %v833_v35, 0.0  ;;  %v903_v34 = vld [vmem:[%s1500_s7] sm:$0x1]  ;;  %v918_v35 = vlaneseq }
 0x276   : > { %v1206_v36 = vpop.f32.mrf.mxu0 }
 0x277   : > { %v836_v38 = vadd.f32 %v1206_v36, %v1442_v33  ;;  %v887_v44 = vmax.f32 %v825_v37, 0.0  ;;  %v919_v36 = vshrl.u32 %v918_v35, 7 }
 0x278   : > { %v827_v39 = vpop.f32.mrf.mxu0 }
 0x279   : > { %v890_v41 = vmax.f32 %v836_v38, 0.0  ;;  %v828_v42 = vadd.f32 %v1442_v33, %v827_v39  ;;  %v920_v37 = vsub.s32 0, %v919_v36  ;;  %v916_v38 = vpop.permute.xlu0 %915 }
 0x27a   : > { %v1209_v43 = vpop.f32.mrf.mxu0 }
 0x27b   : > { %v1448_v45 = vpack.c.bf16 %v890_v41, %v889_v40  ;;  %v888_v46 = vmax.f32 %v828_v42, 0.0  ;;  %v849_v19 = vadd.f32 %v1209_v43, %v1442_v33  ;;  %v921_v39 = vrot.slane %v916_v38, %v920_v37 }
 0x27c   : > { %v840_v47 = vpop.f32.mrf.mxu0 }
 0x27d   : > { %v1450_v48 = vpack.c.bf16 %v888_v46, %v887_v44  ;;  %v893_v22 = vmax.f32 %v849_v19, 0.0  ;;  %v841_v25 = vadd.f32 %v1442_v33, %v840_v47  ;;  %v930_v32 = vsel %vm922_vm2, %v1448_v45, 0 }
 0x27e   : > { %v1210_v49 = vpop.f32.mrf.mxu0 }
 0x27f   : > { %v852_v17 = vadd.f32 %v1210_v49, %v1442_v33  ;;  %v891_v28 = vmax.f32 %v841_v25, 0.0 }
 0x280   : > { %v843_v50 = vpop.f32.mrf.mxu0 }
 0x281   : > { %v894_v20 = vmax.f32 %v852_v17, 0.0  ;;  %v844_v24 = vadd.f32 %v1442_v33, %v843_v50 }
 0x282   : > { %v1213_v51 = vpop.f32.mrf.mxu0 }
 0x283   : > { %v865_v7 = vadd.f32 %v1213_v51, %v1442_v33  ;;  %v907_v23 = vpack.c.bf16 %v894_v20, %v893_v22  ;;  %v892_v26 = vmax.f32 %v844_v24, 0.0 }
 0x284   : > { %v856_v52 = vpop.f32.mrf.mxu0 }
 0x285   : > { %v897_v10 = vmax.f32 %v865_v7, 0.0  ;;  %v857_v13 = vadd.f32 %v1442_v33, %v856_v52  ;;  %v936_v27 = vsel %vm922_vm2, %v907_v23, 0  ;;  %v906_v30 = vpack.c.bf16 %v892_v26, %v891_v28 }
 0x286   : > { %v1214_v53 = vpop.f32.mrf.mxu0 }
 0x287   : > { %v868_v5 = vadd.f32 %v1214_v53, %v1442_v33  ;;  %v895_v16 = vmax.f32 %v857_v13, 0.0  ;;  %v933_v31 = vsel %vm922_vm2, %v906_v30, 0 }
 0x288   : > { %v859_v54 = vpop.f32.mrf.mxu0 }
 0x289   : > { %v898_v8 = vmax.f32 %v868_v5, 0.0  ;;  %v860_v12 = vadd.f32 %v1442_v33, %v859_v54 }
 0x28a   : > { %v1217_v55 = vpop.f32.mrf.mxu0 }
 0x28b   : > { %v881_v57 = vadd.f32 %v1217_v55, %v1442_v33  ;;  %v909_v11 = vpack.c.bf16 %v898_v8, %v897_v10  ;;  %v896_v14 = vmax.f32 %v860_v12, 0.0 }
 0x28c   : > { %v872_v56 = vpop.f32.mrf.mxu0 }
 0x28d   : > { %v901_v61 = vmax.f32 %v881_v57, 0.0  ;;  %v873_v0 = vadd.f32 %v1442_v33, %v872_v56  ;;  %v942_v15 = vsel %vm922_vm2, %v909_v11, 0  ;;  %v908_v18 = vpack.c.bf16 %v896_v14, %v895_v16 }
 0x28e   : > { %v1218_v58 = vpop.f32.mrf.mxu0 }
 0x28f   : > { %v884_v59 = vadd.f32 %v1218_v58, %v1442_v33  ;;  %v899_v4 = vmax.f32 %v873_v0, 0.0  ;;  %v939_v21 = vsel %vm922_vm2, %v908_v18, 0 }
 0x290   : > { %v875_v60 = vpop.f32.mrf.mxu0 }
 0x291   : > { %v902_v62 = vmax.f32 %v884_v59, 0.0  ;;  %v876_v63 = vadd.f32 %v1442_v33, %v875_v60  ;;  %v927_v33 = vsel %vm922_vm2, %v1450_v48, 0 }
 0x293   : > { %v911_v1 = vpack.c.bf16 %v902_v62, %v901_v61  ;;  %v900_v2 = vmax.f32 %v876_v63, 0.0 }
 0x295   : > { %v948_v3 = vsel %vm922_vm2, %v911_v1, 0  ;;  %v910_v6 = vpack.c.bf16 %v900_v2, %v899_v4 }
 0x296   : > { %1220 = vmatpush3.bf16.xpose.msra.mxu1 %v948_v3 }
 0x297   : > { %1221 = vmatprep.subr.bf16.mxu1 %v1281_v29  ;;  %v945_v9 = vsel %vm922_vm2, %v910_v6, 0 }
 0x29e   : > { %1222 = vmatpush3.bf16.xpose.msra.mxu1 %v945_v9 }
 0x29f   : > { %1223 = vmatprep.subr.bf16.mxu1 %v1281_v29 }
 0x2a6   : > { %1224 = vmatpush3.bf16.xpose.msra.mxu1 %v942_v15 }
 0x2a7   : > { %1225 = vmatprep.subr.bf16.mxu1 %v1281_v29 }
 0x2ae   : > { %1226 = vmatpush3.bf16.xpose.msra.mxu1 %v939_v21 }
 0x2af   : > { %1227 = vmatprep.subr.bf16.mxu1 %v1281_v29 }
 0x2b6   : > { %1228 = vmatpush3.bf16.xpose.msra.mxu1 %v936_v27 }
 0x2b7   : > { %1229 = vmatprep.subr.bf16.mxu1 %v1281_v29 }
 0x2be   : > { %1230 = vmatpush3.bf16.xpose.msra.mxu1 %v933_v31 }
 0x2bf   : > { %1231 = vmatprep.subr.bf16.mxu1 %v1281_v29 }
 0x2c6   : > { %1232 = vmatpush3.bf16.xpose.msra.mxu1 %v930_v32 }
 0x2c7   : > { %1233 = vmatprep.subr.bf16.mxu1 %v1281_v29 }
 0x2ce   : > { %1234 = vmatpush3.bf16.xpose.msra.mxu1 %v927_v33 }
 0x2d5   : > { %1236 = vmatmul.mubr.msk.bf16.vlgmr.msra.gmra.mxu1 %vm922_vm2, %v903_v34 }
 0x395   : > { %v984_v40 = vpop.f32.mrf.mxu1 }
 0x396   : > { %v985_v41 = vadd.f32 %v984_v40, %v921_v39 }
 0x397   : > { %v1237_v29 = vpop.f32.mrf.mxu1 }
 0x398   : > { %v1081_v42 = vmul.f32 -1.442695, %v985_v41 }
 0x399   : > { %v987_v43 = vpop.f32.mrf.mxu1 }
 0x39a   : > { %1269 = vpow2.f32 %v1081_v42 }
 0x39b   : > { %v1238_v44 = vpop.f32.mrf.mxu1 }
 0x3a7   : > { %v1270_v45 = vpop.eup %1269 }
 0x3a8   : > { %v993_v46 = vadd.f32 1.0, %v1270_v45 }
 0x3aa   : > { %1271 = vrcp.f32 %v993_v46 }
 0x3b7   : > { %v1272_v47 = vpop.eup %1271 }
 0x3b8   : > { %996 = vst [vmem:[%s332_s23] sm:$0x1] %v1272_v47 }
 0x3b9 PF: > { %s21_s11 = sadd.s32 1, %s1279_s11  }
 0x3ba   : > { %p18_p5 = scmp.ge.s32.totalorder %s21_s11, 4  }
 0x3bc   :  { %20 = sbr.rel (!%p18_p5) target bundleno = 3 (0x3), region = 86 }

</bundles_post_ra>
